<compile_context>
chip_gen: v7x
topology: tpu7x:2x2x1
jax: 0.10.0
libtpu: 0.0.40
codegen_flags: <defaults>
</compile_context>

<pallas_src>
import jax
import jax.numpy as jnp
from jax.experimental import pallas as pl
from jax.experimental.pallas import tpu as pltpu

EPS = 1e-6
LANE = 128


def _make_gploss_kernel(C, R, steps_per_chunk, n_rows, needs_mask):
    """Builds the per-tile kernel (closes over static shape info)."""

    def kernel(x_ref, lbl_ref, inter_ref, sets_ref):
        # x_ref    : (C, R, 128) logits block (native dtype)       VMEM in
        # lbl_ref  : (R, 128)    labels block (int32)              VMEM in
        # inter_ref: (C, 128)    running sum of p*onehot  (f32)    VMEM out (resident)
        # sets_ref : (C, 128)    running sum of p+onehot  (f32)    VMEM out (resident)
        s = pl.program_id(2)

        @pl.when(s == 0)
        def _init():
            inter_ref[...] = jnp.zeros_like(inter_ref)
            sets_ref[...] = jnp.zeros_like(sets_ref)

        lbl = lbl_ref[...]                                        # (R, 128) int32
        xs = [x_ref[c].astype(jnp.float32) for c in range(C)]     # C x (R, 128)

        if needs_mask:
            # Neutralize out-of-range rows BEFORE exp: 0-logits -> exactly
            # uniform softmax (removed by the static epilogue correction),
            # sentinel label C never matches any plane.  NaN-safe by design.
            ch = pl.program_id(1)
            row0 = (ch * steps_per_chunk + s) * R
            ridx = jax.lax.broadcasted_iota(jnp.int32, (R, LANE), 0)
            valid = (row0 + ridx) < n_rows
            xs = [jnp.where(valid, xc, 0.0) for xc in xs]
            lbl = jnp.where(valid, lbl, C)

        # Channel-plane softmax: elementwise max/add across planes only
        # (no cross-sublane reduction, no iota).
        m = xs[0]
        for c in range(1, C):
            m = jnp.maximum(m, xs[c])
        es = [jnp.exp(xc - m) for xc in xs]                        # EUP
        den = es[0]
        for c in range(1, C):
            den = den + es[c]
        inv = pl.reciprocal(den, approx=True)                     # EUP
        inv = inv * (2.0 - den * inv)                              # one Newton step

        inter_rows, sets_rows = [], []
        for c in range(C):
            p = es[c] * inv                                        # (R, 128)
            eq = lbl == c
            # select-based one-hot contributions; sublane reduce -> (1, 128)
            inter_rows.append(jnp.sum(jnp.where(eq, p, 0.0), axis=0, keepdims=True))
            sets_rows.append(jnp.sum(jnp.where(eq, p + 1.0, p), axis=0, keepdims=True))

        # Lane-dense (C, 128) read-modify-write of the resident output block.
        inter_ref[...] += jnp.concatenate(inter_rows, axis=0)
        sets_ref[...] += jnp.concatenate(sets_rows, axis=0)

    return kernel


def gp_loss(s_input, target, dl_beta, num_classes, *,
            rows_per_block=None, pixel_chunks=None):
    """Pallas implementation of GPLoss.forward.

    s_input: (N, C, H, W) logits (NCHW, any float dtype; upcast in-kernel)
    target : (N, H, W) int labels in [0, num_classes)
    dl_beta: scalar DLbeta
    """
    N, C, H, W = s_input.shape
    assert C == num_classes
    HW = H * W

    n_rows = pl.cdiv(HW, LANE)
    hw128 = n_rows * LANE

    # Free reshapes (row-major splits), no transpose.
    x = s_input.reshape(N, C, HW)
    lbl = target.reshape(N, HW).astype(jnp.int32)
    if hw128 != HW:
        # Only pad to the 128-lane boundary (<=127 elements per image); the pad
        # logits (0 -> uniform softmax) and sentinel labels (=C -> zero one-hot)
        # are removed analytically in the epilogue.
        x = jnp.pad(x, ((0, 0), (0, 0), (0, hw128 - HW)))
        lbl = jnp.pad(lbl, ((0, 0), (0, hw128 - HW)), constant_values=C)
    x = x.reshape(N, C, n_rows, LANE)
    lbl = lbl.reshape(N, n_rows, LANE)

    # ---- tile sizing from a VMEM byte budget (inputs double-buffered + f32
    # temporaries), instead of a hard-coded pixel count ----
    x_bytes = jnp.dtype(s_input.dtype).itemsize
    sub = 8 if x_bytes >= 4 else (16 if x_bytes == 2 else 32)      # sublane multiple
    in_bytes_per_row = LANE * (C * x_bytes + 4)                    # logits + labels
    tmp_bytes_per_row = LANE * 4 * (2 * C + 4)                     # rough in-kernel f32 temps
    budget = 20 * 1024 * 1024
    r_budget = budget // (2 * in_bytes_per_row + tmp_bytes_per_row)
    if rows_per_block is not None:
        r_budget = rows_per_block
    r_budget = max(sub, min(int(r_budget), 4096))
    if n_rows <= r_budget:
        R = n_rows                       # full extent -> always a legal block
    else:
        R = (r_budget // sub) * sub      # (sub, 128)-aligned block
    steps_total = pl.cdiv(n_rows, R)

    # v7x: split the pixel axis into parallel chunks when the batch alone
    # cannot feed both TensorCores.
    if pixel_chunks is None:
        n_chunks = 2 if (N == 1 and steps_total >= 2) else 1
    else:
        n_chunks = max(1, min(int(pixel_chunks), steps_total))
    steps_per_chunk = pl.cdiv(steps_total, n_chunks)
    covered_rows = n_chunks * steps_per_chunk * R                  # >= n_rows
    needs_mask = covered_rows > n_rows                             # compile-time bool
    last_block = steps_total - 1

    kernel = _make_gploss_kernel(C, R, steps_per_chunk, n_rows, needs_mask)

    def x_map(n, ch, s):
        # clamp so over-provisioned tail steps re-read a valid block (their
        # contribution is masked out in-kernel)
        blk = jnp.minimum(ch * steps_per_chunk + s, last_block)
        return (n, 0, blk, 0)

    def l_map(n, ch, s):
        blk = jnp.minimum(ch * steps_per_chunk + s, last_block)
        return (n, blk, 0)

    def o_map(n, ch, s):
        return (n, ch, 0, 0)

    inter, sets = pl.pallas_call(
        kernel,
        out_shape=(
            jax.ShapeDtypeStruct((N, n_chunks, C, LANE), jnp.float32),
            jax.ShapeDtypeStruct((N, n_chunks, C, LANE), jnp.float32),
        ),
        grid_spec=pltpu.PrefetchScalarGridSpec(
            num_scalar_prefetch=0,
            grid=(N, n_chunks, steps_per_chunk),
            in_specs=[
                pl.BlockSpec((None, C, R, LANE), x_map),   # logits planes
                pl.BlockSpec((None, R, LANE), l_map),      # labels
            ],
            out_specs=[
                pl.BlockSpec((None, None, C, LANE), o_map),
                pl.BlockSpec((None, None, C, LANE), o_map),
            ],
        ),
        compiler_params=pltpu.CompilerParams(
            dimension_semantics=("parallel", "parallel", "arbitrary"),
            vmem_limit_bytes=40 * 1024 * 1024),
    )(x, lbl)

    # Tiny dice/mean/beta epilogue in plain JAX (O(N * n_chunks * C * 128) work).
    inter_c = jnp.sum(inter, axis=(0, 1, 3))                       # (C,)
    sets_c = jnp.sum(sets, axis=(0, 1, 3))                         # (C,)
    # Every padded/out-of-range pixel contributed exactly 1/C to each channel's
    # p-sum and 0 to inter / one-hot; remove that known constant.
    pad_pixels = N * (covered_rows * LANE - HW)
    if pad_pixels:
        sets_c = sets_c - (pad_pixels / C)
    sets_c = jnp.where(sets_c == 0.0, 2.0 * inter_c, sets_c)
    dice = jnp.mean((2.0 * inter_c + EPS) / (sets_c + EPS))
    return jnp.asarray(dl_beta, jnp.float32) * (1.0 - dice)


def gp_loss_ref(s_input, target, dl_beta, num_classes):
    """Pure-JAX reference mirroring the PyTorch semantics."""
    p = jax.nn.softmax(s_input.astype(jnp.float32), axis=1)             # (N,C,H,W)
    t = jnp.transpose(jax.nn.one_hot(target, num_classes,
                                     dtype=jnp.float32), (0, 3, 1, 2))  # (N,C,H,W)
    dice = 0.0
    for c in range(num_classes):
        pc, tc = p[:, c], t[:, c]
        inter = jnp.sum(pc * tc)
        sets = jnp.sum(pc) + jnp.sum(tc)
        sets = jnp.where(sets == 0.0, 2.0 * inter, sets)
        dice = dice + (2.0 * inter + EPS) / (sets + EPS)
    dice = dice / num_classes
    return jnp.float32(dl_beta) * (1.0 - dice)


if __name__ == "__main__":
    key = jax.random.PRNGKey(0)
    DLbeta = 0.75
    k1, k2, k3, k4 = jax.random.split(key, 4)

    # 1) small aligned case: f32, single-step grid, no masking path
    N, C, H, W = 2, 4, 16, 16
    x1 = jax.random.normal(k1, (N, C, H, W), dtype=jnp.float32)
    t1 = jax.random.randint(k2, (N, H, W), 0, C, dtype=jnp.int32)
    out = jax.block_until_ready(gp_loss(x1, t1, DLbeta, num_classes=C))
    ref = gp_loss_ref(x1, t1, DLbeta, num_classes=C)
    assert jnp.allclose(out, ref, atol=1e-5, rtol=1e-5), (out, ref)

    # 2) native bf16 logits (upcast happens in-kernel)
    out2 = jax.block_until_ready(
        gp_loss(x1.astype(jnp.bfloat16), t1, DLbeta, num_classes=C))
    ref2 = gp_loss_ref(x1.astype(jnp.bfloat16), t1, DLbeta, num_classes=C)
    assert jnp.allclose(out2, ref2, atol=1e-5, rtol=1e-5), (out2, ref2)

    # 3) N=1 -> two parallel pixel chunks; small forced block -> multi-step
    #    reduction axis, ragged tail rows (in-kernel neutral masking) and a
    #    clamped over-provisioned tail block.
    N3, C3, H3, W3 = 1, 3, 48, 48
    x3 = jax.random.normal(k3, (N3, C3, H3, W3), dtype=jnp.float32)
    t3 = jax.random.randint(k4, (N3, H3, W3), 0, C3, dtype=jnp.int32)
    out3 = jax.block_until_ready(
        gp_loss(x3, t3, DLbeta, num_classes=C3, rows_per_block=8))
    ref3 = gp_loss_ref(x3, t3, DLbeta, num_classes=C3)
    assert jnp.allclose(out3, ref3, atol=1e-5, rtol=1e-5), (out3, ref3)

    # 4) H*W not a multiple of 128 -> lane-boundary pad + epilogue correction
    k5, k6 = jax.random.split(k4)
    N4, C4, H4, W4 = 2, 3, 10, 10
    x4 = jax.random.normal(k5, (N4, C4, H4, W4), dtype=jnp.float32)
    t4 = jax.random.randint(k6, (N4, H4, W4), 0, C4, dtype=jnp.int32)
    out4 = jax.block_until_ready(gp_loss(x4, t4, DLbeta, num_classes=C4))
    ref4 = gp_loss_ref(x4, t4, DLbeta, num_classes=C4)
    assert jnp.allclose(out4, ref4, atol=1e-5, rtol=1e-5), (out4, ref4)

    print("KERNEL_OK")
</pallas_src>

<mosaic_0001>
module attributes {stable_mosaic.version = 11 : i64} {
  func.func @kernel(%arg0: i32, %arg1: i32, %arg2: i32, %arg3: memref<1x4x2x128xf32, #tpu.memory_space<vmem>>, %arg4: memref<1x2x128xi32, #tpu.memory_space<vmem>>, %arg5: memref<1x1x4x128xf32, #tpu.memory_space<vmem>>, %arg6: memref<1x1x4x128xf32, #tpu.memory_space<vmem>>) attributes {dimension_semantics = [#tpu.dimension_semantics<parallel>, #tpu.dimension_semantics<parallel>, #tpu.dimension_semantics<arbitrary>], iteration_bounds = array<i64: 2, 1, 1>, scalar_prefetch = 0 : i64, scratch_operands = 0 : i64, tpu.core_type = #tpu.core_type<tc>, window_params = [{transform_indices = @transform_0, window_bounds = array<i64: 1, 4, 2, 128>}, {transform_indices = @transform_1, window_bounds = array<i64: 1, 2, 128>}, {transform_indices = @transform_2, window_bounds = array<i64: 1, 1, 4, 128>}, {transform_indices = @transform_3, window_bounds = array<i64: 1, 1, 4, 128>}]} {
    %c0_i32 = arith.constant 0 : i32
    %0 = arith.cmpi eq, %arg2, %c0_i32 : i32
    %1 = arith.extui %0 : i1 to i32
    %c0_i32_0 = arith.constant 0 : i32
    %2 = arith.cmpi ne, %1, %c0_i32_0 : i32
    scf.if %2 {
      %cst_49 = arith.constant 0.000000e+00 : f32
      %94 = vector.broadcast %cst_49 : f32 to vector<4x128xf32>
      %c0_50 = arith.constant 0 : index
      %c0_51 = arith.constant 0 : index
      %c0_52 = arith.constant 0 : index
      %c0_53 = arith.constant 0 : index
      %95 = vector.load %arg5[%c0_50, %c0_51, %c0_52, %c0_53] : memref<1x1x4x128xf32, #tpu.memory_space<vmem>>, vector<1x1x4x128xf32>
      %96 = vector.shape_cast %95 : vector<1x1x4x128xf32> to vector<4x128xf32>
      %97 = vector.shape_cast %94 : vector<4x128xf32> to vector<1x1x4x128xf32>
      tpu.vector_store %arg5[%c0_50, %c0_51, %c0_52, %c0_53], %97 {strides = array<i32>} : memref<1x1x4x128xf32, #tpu.memory_space<vmem>>, vector<1x1x4x128xf32>,
      %cst_54 = arith.constant 0.000000e+00 : f32
      %98 = vector.broadcast %cst_54 : f32 to vector<4x128xf32>
      %c0_55 = arith.constant 0 : index
      %c0_56 = arith.constant 0 : index
      %c0_57 = arith.constant 0 : index
      %c0_58 = arith.constant 0 : index
      %99 = vector.load %arg6[%c0_55, %c0_56, %c0_57, %c0_58] : memref<1x1x4x128xf32, #tpu.memory_space<vmem>>, vector<1x1x4x128xf32>
      %100 = vector.shape_cast %99 : vector<1x1x4x128xf32> to vector<4x128xf32>
      %101 = vector.shape_cast %98 : vector<4x128xf32> to vector<1x1x4x128xf32>
      tpu.vector_store %arg6[%c0_55, %c0_56, %c0_57, %c0_58], %101 {strides = array<i32>} : memref<1x1x4x128xf32, #tpu.memory_space<vmem>>, vector<1x1x4x128xf32>,
    } else {
    }
    %c0 = arith.constant 0 : index
    %c0_1 = arith.constant 0 : index
    %c0_2 = arith.constant 0 : index
    %3 = vector.load %arg4[%c0, %c0_1, %c0_2] : memref<1x2x128xi32, #tpu.memory_space<vmem>>, vector<1x2x128xi32>
    %4 = vector.shape_cast %3 : vector<1x2x128xi32> to vector<2x128xi32>
    %c0_3 = arith.constant 0 : index
    %c0_4 = arith.constant 0 : index
    %c0_5 = arith.constant 0 : index
    %c0_6 = arith.constant 0 : index
    %5 = vector.load %arg3[%c0_3, %c0_4, %c0_5, %c0_6] : memref<1x4x2x128xf32, #tpu.memory_space<vmem>>, vector<1x1x2x128xf32>
    %6 = vector.shape_cast %5 : vector<1x1x2x128xf32> to vector<2x128xf32>
    %c0_7 = arith.constant 0 : index
    %c1 = arith.constant 1 : index
    %c0_8 = arith.constant 0 : index
    %c0_9 = arith.constant 0 : index
    %7 = vector.load %arg3[%c0_7, %c1, %c0_8, %c0_9] : memref<1x4x2x128xf32, #tpu.memory_space<vmem>>, vector<1x1x2x128xf32>
    %8 = vector.shape_cast %7 : vector<1x1x2x128xf32> to vector<2x128xf32>
    %c0_10 = arith.constant 0 : index
    %c2 = arith.constant 2 : index
    %c0_11 = arith.constant 0 : index
    %c0_12 = arith.constant 0 : index
    %9 = vector.load %arg3[%c0_10, %c2, %c0_11, %c0_12] : memref<1x4x2x128xf32, #tpu.memory_space<vmem>>, vector<1x1x2x128xf32>
    %10 = vector.shape_cast %9 : vector<1x1x2x128xf32> to vector<2x128xf32>
    %c0_13 = arith.constant 0 : index
    %c3 = arith.constant 3 : index
    %c0_14 = arith.constant 0 : index
    %c0_15 = arith.constant 0 : index
    %11 = vector.load %arg3[%c0_13, %c3, %c0_14, %c0_15] : memref<1x4x2x128xf32, #tpu.memory_space<vmem>>, vector<1x1x2x128xf32>
    %12 = vector.shape_cast %11 : vector<1x1x2x128xf32> to vector<2x128xf32>
    %13 = arith.maximumf %6, %8 : vector<2x128xf32>
    %14 = arith.maximumf %13, %10 : vector<2x128xf32>
    %15 = arith.maximumf %14, %12 : vector<2x128xf32>
    %16 = arith.subf %6, %15 : vector<2x128xf32>
    %17 = math.exp %16 : vector<2x128xf32>
    %18 = arith.subf %8, %15 : vector<2x128xf32>
    %19 = math.exp %18 : vector<2x128xf32>
    %20 = arith.subf %10, %15 : vector<2x128xf32>
    %21 = math.exp %20 : vector<2x128xf32>
    %22 = arith.subf %12, %15 : vector<2x128xf32>
    %23 = math.exp %22 : vector<2x128xf32>
    %24 = arith.addf %17, %19 : vector<2x128xf32>
    %25 = arith.addf %24, %21 : vector<2x128xf32>
    %26 = arith.addf %25, %23 : vector<2x128xf32>
    %27 = tpu.reciprocal %26 {approx = true} : vector<2x128xf32> -> vector<2x128xf32>
    %28 = arith.mulf %26, %27 : vector<2x128xf32>
    %cst = arith.constant 2.000000e+00 : f32
    %29 = vector.broadcast %cst : f32 to vector<2x128xf32>
    %30 = arith.subf %29, %28 : vector<2x128xf32>
    %31 = arith.mulf %27, %30 : vector<2x128xf32>
    %32 = arith.mulf %17, %31 : vector<2x128xf32>
    %c0_i32_16 = arith.constant 0 : i32
    %33 = vector.broadcast %c0_i32_16 : i32 to vector<2x128xi32>
    %34 = arith.cmpi eq, %4, %33 : vector<2x128xi32>
    %cst_17 = arith.constant 0.000000e+00 : f32
    %35 = vector.broadcast %cst_17 : f32 to vector<2x128xf32>
    %36 = arith.select %34, %32, %35 : vector<2x128xi1>, vector<2x128xf32>
    %cst_18 = arith.constant dense<0.000000e+00> : vector<128xf32>
    %37 = vector.multi_reduction <add>, %36, %cst_18 [0] : vector<2x128xf32> to vector<128xf32>
    %38 = vector.shape_cast %37 : vector<128xf32> to vector<1x128xf32>
    %cst_19 = arith.constant 1.000000e+00 : f32
    %39 = vector.broadcast %cst_19 : f32 to vector<2x128xf32>
    %40 = arith.addf %32, %39 : vector<2x128xf32>
    %41 = arith.select %34, %40, %32 : vector<2x128xi1>, vector<2x128xf32>
    %cst_20 = arith.constant dense<0.000000e+00> : vector<128xf32>
    %42 = vector.multi_reduction <add>, %41, %cst_20 [0] : vector<2x128xf32> to vector<128xf32>
    %43 = vector.shape_cast %42 : vector<128xf32> to vector<1x128xf32>
    %44 = arith.mulf %19, %31 : vector<2x128xf32>
    %c1_i32 = arith.constant 1 : i32
    %45 = vector.broadcast %c1_i32 : i32 to vector<2x128xi32>
    %46 = arith.cmpi eq, %4, %45 : vector<2x128xi32>
    %cst_21 = arith.constant 0.000000e+00 : f32
    %47 = vector.broadcast %cst_21 : f32 to vector<2x128xf32>
    %48 = arith.select %46, %44, %47 : vector<2x128xi1>, vector<2x128xf32>
    %cst_22 = arith.constant dense<0.000000e+00> : vector<128xf32>
    %49 = vector.multi_reduction <add>, %48, %cst_22 [0] : vector<2x128xf32> to vector<128xf32>
    %50 = vector.shape_cast %49 : vector<128xf32> to vector<1x128xf32>
    %cst_23 = arith.constant 1.000000e+00 : f32
    %51 = vector.broadcast %cst_23 : f32 to vector<2x128xf32>
    %52 = arith.addf %44, %51 : vector<2x128xf32>
    %53 = arith.select %46, %52, %44 : vector<2x128xi1>, vector<2x128xf32>
    %cst_24 = arith.constant dense<0.000000e+00> : vector<128xf32>
    %54 = vector.multi_reduction <add>, %53, %cst_24 [0] : vector<2x128xf32> to vector<128xf32>
    %55 = vector.shape_cast %54 : vector<128xf32> to vector<1x128xf32>
    %56 = arith.mulf %21, %31 : vector<2x128xf32>
    %c2_i32 = arith.constant 2 : i32
    %57 = vector.broadcast %c2_i32 : i32 to vector<2x128xi32>
    %58 = arith.cmpi eq, %4, %57 : vector<2x128xi32>
    %cst_25 = arith.constant 0.000000e+00 : f32
    %59 = vector.broadcast %cst_25 : f32 to vector<2x128xf32>
    %60 = arith.select %58, %56, %59 : vector<2x128xi1>, vector<2x128xf32>
    %cst_26 = arith.constant dense<0.000000e+00> : vector<128xf32>
    %61 = vector.multi_reduction <add>, %60, %cst_26 [0] : vector<2x128xf32> to vector<128xf32>
    %62 = vector.shape_cast %61 : vector<128xf32> to vector<1x128xf32>
    %cst_27 = arith.constant 1.000000e+00 : f32
    %63 = vector.broadcast %cst_27 : f32 to vector<2x128xf32>
    %64 = arith.addf %56, %63 : vector<2x128xf32>
    %65 = arith.select %58, %64, %56 : vector<2x128xi1>, vector<2x128xf32>
    %cst_28 = arith.constant dense<0.000000e+00> : vector<128xf32>
    %66 = vector.multi_reduction <add>, %65, %cst_28 [0] : vector<2x128xf32> to vector<128xf32>
    %67 = vector.shape_cast %66 : vector<128xf32> to vector<1x128xf32>
    %68 = arith.mulf %23, %31 : vector<2x128xf32>
    %c3_i32 = arith.constant 3 : i32
    %69 = vector.broadcast %c3_i32 : i32 to vector<2x128xi32>
    %70 = arith.cmpi eq, %4, %69 : vector<2x128xi32>
    %cst_29 = arith.constant 0.000000e+00 : f32
    %71 = vector.broadcast %cst_29 : f32 to vector<2x128xf32>
    %72 = arith.select %70, %68, %71 : vector<2x128xi1>, vector<2x128xf32>
    %cst_30 = arith.constant dense<0.000000e+00> : vector<128xf32>
    %73 = vector.multi_reduction <add>, %72, %cst_30 [0] : vector<2x128xf32> to vector<128xf32>
    %74 = vector.shape_cast %73 : vector<128xf32> to vector<1x128xf32>
    %cst_31 = arith.constant 1.000000e+00 : f32
    %75 = vector.broadcast %cst_31 : f32 to vector<2x128xf32>
    %76 = arith.addf %68, %75 : vector<2x128xf32>
    %77 = arith.select %70, %76, %68 : vector<2x128xi1>, vector<2x128xf32>
    %cst_32 = arith.constant dense<0.000000e+00> : vector<128xf32>
    %78 = vector.multi_reduction <add>, %77, %cst_32 [0] : vector<2x128xf32> to vector<128xf32>
    %79 = vector.shape_cast %78 : vector<128xf32> to vector<1x128xf32>
    %c0_33 = arith.constant 0 : index
    %c0_34 = arith.constant 0 : index
    %c0_35 = arith.constant 0 : index
    %c0_36 = arith.constant 0 : index
    %80 = vector.load %arg5[%c0_33, %c0_34, %c0_35, %c0_36] : memref<1x1x4x128xf32, #tpu.memory_space<vmem>>, vector<1x1x4x128xf32>
    %81 = vector.shape_cast %80 : vector<1x1x4x128xf32> to vector<4x128xf32>
    %82 = tpu.concatenate %38, %50, %62, %74 in 0 : vector<1x128xf32>, vector<1x128xf32>, vector<1x128xf32>, vector<1x128xf32> -> vector<4x128xf32>
    %83 = arith.addf %81, %82 : vector<4x128xf32>
    %c0_37 = arith.constant 0 : index
    %c0_38 = arith.constant 0 : index
    %c0_39 = arith.constant 0 : index
    %c0_40 = arith.constant 0 : index
    %84 = vector.load %arg5[%c0_37, %c0_38, %c0_39, %c0_40] : memref<1x1x4x128xf32, #tpu.memory_space<vmem>>, vector<1x1x4x128xf32>
    %85 = vector.shape_cast %84 : vector<1x1x4x128xf32> to vector<4x128xf32>
    %86 = vector.shape_cast %83 : vector<4x128xf32> to vector<1x1x4x128xf32>
    tpu.vector_store %arg5[%c0_37, %c0_38, %c0_39, %c0_40], %86 {strides = array<i32>} : memref<1x1x4x128xf32, #tpu.memory_space<vmem>>, vector<1x1x4x128xf32>,
    %c0_41 = arith.constant 0 : index
    %c0_42 = arith.constant 0 : index
    %c0_43 = arith.constant 0 : index
    %c0_44 = arith.constant 0 : index
    %87 = vector.load %arg6[%c0_41, %c0_42, %c0_43, %c0_44] : memref<1x1x4x128xf32, #tpu.memory_space<vmem>>, vector<1x1x4x128xf32>
    %88 = vector.shape_cast %87 : vector<1x1x4x128xf32> to vector<4x128xf32>
    %89 = tpu.concatenate %43, %55, %67, %79 in 0 : vector<1x128xf32>, vector<1x128xf32>, vector<1x128xf32>, vector<1x128xf32> -> vector<4x128xf32>
    %90 = arith.addf %88, %89 : vector<4x128xf32>
    %c0_45 = arith.constant 0 : index
    %c0_46 = arith.constant 0 : index
    %c0_47 = arith.constant 0 : index
    %c0_48 = arith.constant 0 : index
    %91 = vector.load %arg6[%c0_45, %c0_46, %c0_47, %c0_48] : memref<1x1x4x128xf32, #tpu.memory_space<vmem>>, vector<1x1x4x128xf32>
    %92 = vector.shape_cast %91 : vector<1x1x4x128xf32> to vector<4x128xf32>
    %93 = vector.shape_cast %90 : vector<4x128xf32> to vector<1x1x4x128xf32>
    tpu.vector_store %arg6[%c0_45, %c0_46, %c0_47, %c0_48], %93 {strides = array<i32>} : memref<1x1x4x128xf32, #tpu.memory_space<vmem>>, vector<1x1x4x128xf32>,
    return
  }
  func.func @transform_0(%arg0: i32, %arg1: i32, %arg2: i32) -> (i32, i32, i32, i32) {
    %c1_i32 = arith.constant 1 : i32
    %0 = arith.muli %arg1, %c1_i32 : i32
    %1 = arith.addi %0, %arg2 : i32
    %c0_i32 = arith.constant 0 : i32
    %2 = arith.minsi %1, %c0_i32 : i32
    %c0_i32_0 = arith.constant 0 : i32
    %c0_i32_1 = arith.constant 0 : i32
    %c0_i32_2 = arith.constant 0 : i32
    return %arg0, %c0_i32_0, %2, %c0_i32_1 : i32, i32, i32, i32
  }
  func.func @transform_1(%arg0: i32, %arg1: i32, %arg2: i32) -> (i32, i32, i32) {
    %c1_i32 = arith.constant 1 : i32
    %0 = arith.muli %arg1, %c1_i32 : i32
    %1 = arith.addi %0, %arg2 : i32
    %c0_i32 = arith.constant 0 : i32
    %2 = arith.minsi %1, %c0_i32 : i32
    %c0_i32_0 = arith.constant 0 : i32
    %c0_i32_1 = arith.constant 0 : i32
    return %arg0, %2, %c0_i32_0 : i32, i32, i32
  }
  func.func @transform_2(%arg0: i32, %arg1: i32, %arg2: i32) -> (i32, i32, i32, i32) {
    %c0_i32 = arith.constant 0 : i32
    %c0_i32_0 = arith.constant 0 : i32
    %c0_i32_1 = arith.constant 0 : i32
    return %arg0, %arg1, %c0_i32, %c0_i32_0 : i32, i32, i32, i32
  }
  func.func @transform_3(%arg0: i32, %arg1: i32, %arg2: i32) -> (i32, i32, i32, i32) {
    %c0_i32 = arith.constant 0 : i32
    %c0_i32_0 = arith.constant 0 : i32
    %c0_i32_1 = arith.constant 0 : i32
    return %arg0, %arg1, %c0_i32, %c0_i32_0 : i32, i32, i32, i32
  }
}

</mosaic_0001>

<bundles_post_ra>
// kernel: tpu_custom_call.1
= control target key start
LH: loop header
LB: loop body
LE: loop exit
PB: predicated region body
PF: predicated region fallthrough
CT: control target
= control target key end

     0   :  { %9 = vsyncpa [#allocation3], 0  ;;  %s1194_s0 = inlined_call_operand.hbm [shape: f32[2,4,2,128], index: 0, kind: input, shape index: {}]   ;;  %s1195_s1 = inlined_call_operand.hbm [shape: s32[2,2,128], index: 1, kind: input, shape index: {}]   ;;  %s1196_s2 = inlined_call_operand.hbm [shape: f32[2,1,4,128], index: 2, kind: output, shape index: {0}]   ;;  %s1197_s3 = inlined_call_operand.hbm [shape: f32[2,1,4,128], index: 3, kind: output, shape index: {1}]  }
   0x1   :  { %11 = vsyncpa [#allocation3 + $0x1], 0 }
   0x2   :  { %12 = vsyncpa [#allocation6], 0 }
   0x3   :  { %14 = vsyncpa [#allocation6 + $0x1], 0 }
   0x4   :  { %15 = vsyncpa [#allocation4], 0 }
   0x5   :  { %17 = vsyncpa [#allocation4 + $0x1], 0 }
   0x6   :  { %18 = vsyncpa [#allocation9], 0 }
   0x7   :  { %20 = vsyncpa [#allocation9 + $0x1], 0  ;;  %s908_s12 = smov 0   ;;  %s910_s13 = smov 0  }
   0x8   :  { %s912_s14 = smov 0   ;;  %s914_s15 = smov 0  }
   0x9   :  { %s916_s16 = smov 0   ;;  %s918_s17 = smov 0  }
   0xa LB: > { %s592_s18 = sadd.s32 4294967295, %s879_s17   ;;  %s593_s19 = sadd.s32 4294967294, %s879_s17   ;;  %s879_s17 = sphi %s918_s17, %s26_s17   ;;  %s875_s16 = sphi %s916_s16, %s1216_s16   ;;  %s871_s15 = sphi %s914_s15, %s1215_s15   ;;  %s867_s14 = sphi %s912_s14, %s1214_s14   ;;  %s863_s13 = sphi %s910_s13, %s1213_s13   ;;  %s859_s12 = sphi %s908_s12, %s1212_s12  }
   0xb   : > { %s45_s20 = sadd.s32 1, %s875_s16  ;;  %s60_s21 = sadd.s32 1, %s867_s14 }
   0xc   : > { %p47_p0 = scmp.ge.s32.totalorder %s45_s20, 2  ;;  %p67_p1 = scmp.ne.s32.totalorder %s867_s14, %s863_s13 }
   0xd   : > { %p68_p2 = scmp.eq.s32.totalorder %s879_s17, 0  ;;  %p73_p3 = scmp.ne.s32.totalorder %s863_s13, %s859_s12 }
   0xe   : > { %s1218_s20 = smov (%p47_p0, %s45_s20), 0  ;;  %p74_p5 = scmp.eq.s32.totalorder %s592_s18, 0 }
   0xf   : > { %p949_p4 = por %p68_p2, %p67_p1  ;;  %s55_s23 = ssub.s32 %s875_s16, %s1218_s20 }
  0x10   : > { %p133_p6 = scmp.eq.s32.totalorder %s592_s18, 1  ;;  %p58_p7 = scmp.eq.s32.totalorder %s55_s23, 0 }
  0x11   : > { %p955_p8 = por %p74_p5, %p73_p3  ;;  %p139_p10 = scmp.eq.s32.totalorder %s593_s19, 1 }
  0x12   : > { %p959_p9 = por %p133_p6, %p67_p1  ;;  %p638_p13 = scmp.lt.s32.totalorder %s879_s17, 2 }
  0x13   : > { %s1201_s24 = scalar_select %p955_p8, 1, 0 }
  0x14   : > { %s1202_s25 = scalar_select %p959_p9, 1, 0 }
  0x15   : > { %s964_s26 = scalar_select %p58_p7, %s867_s14, %s60_s21  }
  0x16   : > { %p966_p11 = por %p139_p10, %p73_p3  ;;  %s973_s28 = sand.u32 1, %s867_s14  }
  0x17   : > { %s596_s29 = sshll.u32 %s973_s28, 3  ;;  %s615_s30 = sshll.u32 %s875_s16, 7 }
  0x18   : > { %s1203_s27 = scalar_select %p966_p11, 1, 0 }
  0x19   : > { %s980_s6 = scalar_lea.hbm %s1194_s0, %s615_s30  ;;  %s191_s7 = scalar_lea.vmem [#allocation2], %s596_s29 }
  0x1a   : > { %s202_s8 = sshll.u32 %s191_s7, 4  ;;  %p986_p0 = pnand %p638_p13, %p949_p4  ;;  %s982_s8 = int_to_ptr.vmem [resolvable:$true] %s202_s8 }
  0x1b   : > { %s188_s10 = scalar_lea.sflag [#allocation3], %s973_s28  ;;  %s701_s11 = scalar_lea.hbm %s980_s6, 128 }
  0x1c   : > { %p702_p2 = scmp.ne.s32.totalorder %s980_s6, %s701_s11  ;;  %p703_p3 = pneg %p986_p0 }
  0x1d   : > { %s706_s21 = scalar_lea.hbm %s1194_s0, 256  ;;  %p707_p4 = scmp.lt.u32.totalorder %s980_s6, %s1194_s0 }
  0x1e   : > { %p704_p5 = pnand %p703_p3, %p702_p2  ;;  %p708_p7 = scmp.lt.u32.totalorder %s706_s21, %s701_s11 }
  0x1f   : > { %p710_p13 = scmp.lt.u32.totalorder %s701_s11, %s980_s6 }
  0x20   : > { %p705_p6 = pneg %p704_p5  ;;  %p709_p10 = por %p708_p7, %p707_p4 }
  0x22   : > { %p711_p12 = por %p710_p13, %p709_p10 }
  0x24   : > { %p712_p1 = pnand %p711_p12, %p705_p6 }
  0x26   : > { %715 = shalt.err (!%p712_p1)
}
  0x27   : > { %s716_s29 = scalar_lea.vmem %s982_s8, 128  ;;  %s881_s30 = smov [#allocation2]  }
  0x28   : > { %p717_p2 = scmp.ne.s32.totalorder %s982_s8, %s716_s29  ;;  %s721_s4 = sshll.u32 %s881_s30, 4  ;;  %s722_s4 = int_to_ptr.vmem [resolvable:$false] %s721_s4 }
  0x29   : > { %s723_s5 = scalar_lea.vmem %s722_s4, 256  ;;  %p724_p9 = scmp.lt.s32.totalorder %s982_s8, %s722_s4 }
  0x2a   : > { %p719_p5 = pnand %p717_p2, %p703_p3  ;;  %p725_p4 = scmp.lt.s32.totalorder %s723_s5, %s716_s29 }
  0x2c   : > { %p720_p11 = pneg %p719_p5  ;;  %p726_p7 = por %p725_p4, %p724_p9 }
  0x2e   : > { %p727_p10 = pnand %p726_p7, %p720_p11 }
  0x30   : > { %730 = shalt.err (!%p727_p10)
}
  0x31   : > { %s882_s7 = smov 32   ;;  %s883_s11 = smov 2  }
  0x32   : > { %627 = dma.hbm_to_vmem [thread:$0]  (!%p986_p0), %s980_s6, 128, %s982_s8, %s188_s10, %s882_s7, %s882_s7, %s883_s11  }
  0x33   : > { %p232_p12 = scmp.lt.s32.totalorder %s879_s17, 3  ;;  %s599_s18 = sshll.u32 %s973_s28, 1 }
  0x34   : > { %s600_s19 = sshll.u32 %s875_s16, 5  ;;  %p1205_p9 = scmp.ge.s32.totalorder %s879_s17, 1 }
  0x35   : > { %s1031_s29 = scalar_lea.hbm %s1195_s1, %s600_s19  ;;  %s216_s30 = scalar_lea.vmem [#allocation5], %s599_s18 }
  0x36   : > { %p1024_p11 = pnand %p1205_p9, %p232_p12  ;;  %s227_s4 = sshll.u32 %s216_s30, 4  ;;  %s228_s4 = int_to_ptr.vmem [resolvable:$true] %s227_s4 }
  0x37   : > { %s213_s6 = scalar_lea.sflag [#allocation6], %s973_s28  ;;  %s731_s8 = scalar_lea.hbm %s1031_s29, 32 }
  0x38   : > { %s1206_s21 = scalar_select %p1024_p11, 1, 0 }
  0x39   : > { %p732_p1 = scmp.ne.s32.totalorder %s1031_s29, %s731_s8  ;;  %s736_s7 = scalar_lea.hbm %s1195_s1, 64 }
  0x3a   : > { %p737_p2 = scmp.lt.u32.totalorder %s1031_s29, %s1195_s1  ;;  %p738_p5 = scmp.lt.u32.totalorder %s736_s7, %s731_s8 }
  0x3b   : > { %p734_p6 = pnand %p732_p1, %p703_p3  ;;  %p740_p7 = scmp.lt.u32.totalorder %s731_s8, %s1031_s29 }
  0x3c   : > { %p739_p4 = por %p738_p5, %p737_p2 }
  0x3d   : > { %p735_p13 = pneg %p734_p6 }
  0x3e   : > { %p741_p10 = por %p740_p7, %p739_p4 }
  0x40   : > { %p742_p12 = pnand %p741_p10, %p735_p13 }
  0x42   : > { %745 = shalt.err (!%p742_p12)
}
  0x43   : > { %s746_s28 = scalar_lea.vmem %s228_s4, 32  ;;  %s884_s18 = smov [#allocation5]  }
  0x44   : > { %p747_p9 = scmp.ne.s32.totalorder %s228_s4, %s746_s28  ;;  %s751_s22 = sshll.u32 %s884_s18, 4  ;;  %s752_s22 = int_to_ptr.vmem [resolvable:$false] %s751_s22 }
  0x45   : > { %s753_s23 = scalar_lea.vmem %s752_s22, 64  ;;  %p754_p8 = scmp.lt.s32.totalorder %s228_s4, %s752_s22 }
  0x46   : > { %p749_p1 = pnand %p747_p9, %p703_p3  ;;  %p755_p11 = scmp.lt.s32.totalorder %s753_s23, %s746_s28 }
  0x48   : > { %p750_p6 = pneg %p749_p1  ;;  %p756_p2 = por %p755_p11, %p754_p8 }
  0x4a   : > { %p757_p5 = pnand %p756_p2, %p750_p6 }
  0x4c   : > { %760 = shalt.err (!%p757_p5)
}
  0x4d   : > { %630 = dma.hbm_to_vmem [thread:$0]  (!%p986_p0), %s1031_s29, 32, %s228_s4, %s213_s6  }
  0x4e   : > { %p1207_p13 = scmp.ne.s32.totalorder %s1206_s21, 0 }
  0x4f   : > { %s1056_s30 = sand.u32 (!%p1207_p13), 1, %s863_s13   ;;  %p1208_p3 = scmp.ne.s32.totalorder (!%p1207_p13), %s1201_s24, 0 }
  0x50   : > { %236 = sbr.rel (%p1207_p13) target bundleno = 198 (0xc6), region = 28  ;;  %s602_s8 = sshll.u32 (!%p1207_p13), %s1056_s30, 3 }
  0x51   : > { %s239_s10 = scalar_lea.sflag (!%p1207_p13), [#allocation3], %s1056_s30  ;;  %s242_s5 = scalar_lea.vmem (!%p1207_p13), [#allocation2], %s602_s8 }
  0x57   : > { %842 = dma.done.wait (%p1208_p3), %s239_s10, 128  }
  0x58   : > { %844 = vsyncadd (%p1208_p3), %s239_s10, 4294967168  ;;  %s603_s9 = sshll.u32 %s1056_s30, 1  ;;  %s248_s21 = scalar_lea.sflag [#allocation6], %s1056_s30 }
  0x59   : > { %s1066_s29 = scalar_lea.vmem [#allocation5], %s603_s9 }
  0x5a   : > { %846 = dma.done.wait (%p1208_p3), %s248_s21, 32  }
  0x5b   : > { %848 = vsyncadd (%p1208_p3), %s248_s21, 4294967264  ;;  %s604_s4 = sshll.u32 %s1056_s30, 2  ;;  %v885_v0 = vmov 0.0   ;;  %v297_v1 = vld [vmem:[%s242_s5] sm:$0x3]  ;;  %vm329_vm0 = vcmask 1041408  }
  0x5c   : > { %s1073_s6 = scalar_lea.vmem [#allocation7], %s604_s4  ;;  %s1076_s7 = scalar_lea.vmem [#allocation8], %s604_s4  ;;  %v606_v2 = vld [vmem:[%s242_s5 + $0x2] sm:$0x3]  ;;  %v607_v3 = vld [vmem:[%s242_s5 + $0x4] sm:$0x3] }
  0x5d   : > { %294 = vst [vmem:[%s1073_s6] sm:$0xf] %v885_v0  ;;  %295 = vst [vmem:[%s1076_s7] sm:$0xf] %v885_v0  ;;  %v304_v4 = vmax.f32 %v297_v1, %v606_v2  ;;  %v608_v5 = vld [vmem:[%s242_s5 + $0x6] sm:$0x3]  ;;  %v296_v25 = vld [vmem:[%s1066_s29] sm:$0x3] }
  0x5e   : > { %vm327_vm1 = vcmp.eq.s32.totalorder %v296_v25, 0  ;;  %vm347_vm2 = vcmp.eq.s32.totalorder %v296_v25, 1  ;;  %vm366_vm3 = vcmp.eq.s32.totalorder %v296_v25, 2  ;;  %vm385_vm4 = vcmp.eq.s32.totalorder %v296_v25, 3  ;;  %s611_s24 = sshll.u32 %s871_s15, 6  ;;  %s437_s11 = sshll.u32 %s1073_s6, 4  ;;  %s1109_s11 = int_to_ptr.vmem [resolvable:$true] %s437_s11 }
  0x5f   : > { %v305_v6 = vmax.f32 %v304_v4, %v607_v3  ;;  %vm404_vm5 = vcmask 1040384   ;;  %vm407_vm6 = vcmask 1042432   ;;  %s1107_s18 = scalar_lea.hbm %s1196_s2, %s611_s24  ;;  %s418_s22 = scalar_lea.sflag [#allocation4], %s1056_s30 }
  0x60   : > { %s761_s23 = scalar_lea.vmem %s1109_s11, 64  ;;  %p1209_p0 = scmp.ne.s32.totalorder %s1202_s25, 0 }
  0x61   : > { %v306_v7 = vmax.f32 %v305_v6, %v608_v5  ;;  %p762_p8 = scmp.ne.s32.totalorder %s1109_s11, %s761_s23  ;;  %s886_s8 = smov [#allocation7]  }
  0x62   : > { %s765_s10 = sshll.u32 %s886_s8, 4  ;;  %s766_s10 = int_to_ptr.vmem [resolvable:$false] %s765_s10 }
  0x63   : > { %v307_v8 = vsub.f32 %v297_v1, %v306_v7  ;;  %v310_v9 = vsub.f32 %v606_v2, %v306_v7  ;;  %v313_v10 = vsub.f32 %v607_v3, %v306_v7  ;;  %v316_v11 = vsub.f32 %v608_v5, %v306_v7  ;;  %p763_p11 = pnand %p762_p8, %p1209_p0  ;;  %s767_s5 = scalar_lea.vmem %s766_s10, 128 }
  0x64   : > { %p768_p7 = scmp.lt.s32.totalorder %s1109_s11, %s766_s10  ;;  %p769_p10 = scmp.lt.s32.totalorder %s767_s5, %s761_s23 }
  0x65   : > { %v308_v12 = vmul.f32 1.442695, %v307_v8  ;;  %v311_v13 = vmul.f32 1.442695, %v310_v9  ;;  %v314_v14 = vmul.f32 1.442695, %v313_v10  ;;  %p764_p4 = pneg %p763_p11 }
  0x66   : > { %v317_v15 = vmul.f32 1.442695, %v316_v11  ;;  %p770_p12 = por %p769_p10, %p768_p7 }
  0x67   : > { %691 = vpow2.f32 %v308_v12 }
  0x68   : > { %693 = vpow2.f32 %v311_v13  ;;  %p771_p9 = pnand %p770_p12, %p764_p4 }
  0x69   : > { %695 = vpow2.f32 %v314_v14 }
  0x6a   : > { %697 = vpow2.f32 %v317_v15 }
  0x71   : > { %v692_v16 = vpop.eup %691 }
  0x72   : > { %v694_v17 = vpop.eup %693 }
  0x73   : > { %v696_v18 = vpop.eup %695  ;;  %v319_v19 = vadd.f32 %v694_v17, %v692_v16 }
  0x74   : > { %v698_v20 = vpop.eup %697 }
  0x75   : > { %v320_v21 = vadd.f32 %v696_v18, %v319_v19 }
  0x77   : > { %v321_v22 = vadd.f32 %v698_v20, %v320_v21 }
  0x79   : > { %699 = vrcp.f32 %v321_v22 }
  0x83   : > { %v700_v23 = vpop.eup %699 }
  0x84   : > { %v323_v24 = vmul.f32 %v700_v23, %v321_v22 }
  0x86   : > { %v324_v26 = vsub.f32 2.0, %v323_v24  ;;  %v403_v24 = vld [vmem:[%s1073_s6] sm:$0xf] }
  0x88   : > { %v325_v27 = vmul.f32 %v700_v23, %v324_v26 }
  0x8a   : > { %v326_v28 = vmul.f32 %v692_v16, %v325_v27  ;;  %v346_v29 = vmul.f32 %v694_v17, %v325_v27  ;;  %v365_v30 = vmul.f32 %v696_v18, %v325_v27  ;;  %v384_v31 = vmul.f32 %v698_v20, %v325_v27 }
  0x8c   : > { %v328_v32 = vsel %vm327_vm1, %v326_v28, 0.0  ;;  %v348_v33 = vsel %vm347_vm2, %v346_v29, 0.0  ;;  %v367_v34 = vsel %vm366_vm3, %v365_v30, 0.0  ;;  %v386_v35 = vsel %vm385_vm4, %v384_v31, 0.0 }
  0x8d   : > { %v330_v36 = vsel %vm329_vm0, %v328_v32, 0.0  ;;  %v349_v37 = vsel %vm329_vm0, %v348_v33, 0.0  ;;  %v368_v38 = vsel %vm329_vm0, %v367_v34, 0.0  ;;  %v387_v39 = vsel %vm329_vm0, %v386_v35, 0.0 }
  0x8e   : > { %v331_v40 = vrot.slane %v330_v36, 4  ;;  %v350_v41 = vrot.slane %v349_v37, 4  ;;  %v369_v42 = vrot.slane %v368_v38, 4  ;;  %v388_v43 = vrot.slane %v387_v39, 4 }
  0x8f   : > { %v337_v44 = vadd.f32 1.0, %v326_v28  ;;  %v356_v45 = vadd.f32 1.0, %v346_v29  ;;  %v375_v46 = vadd.f32 1.0, %v365_v30  ;;  %v394_v47 = vadd.f32 1.0, %v384_v31 }
  0x90   : > { %v332_v48 = vadd.f32 %v331_v40, %v330_v36  ;;  %v351_v49 = vadd.f32 %v350_v41, %v349_v37  ;;  %v370_v50 = vadd.f32 %v369_v42, %v368_v38  ;;  %v389_v51 = vadd.f32 %v388_v43, %v387_v39 }
  0x91   : > { %v338_v52 = vsel %vm327_vm1, %v337_v44, %v326_v28  ;;  %v357_v53 = vsel %vm347_vm2, %v356_v45, %v346_v29  ;;  %v376_v54 = vsel %vm366_vm3, %v375_v46, %v365_v30  ;;  %v395_v55 = vsel %vm385_vm4, %v394_v47, %v384_v31 }
  0x92   : > { %v333_v56 = vrot.slane %v332_v48, 2  ;;  %v352_v57 = vrot.slane %v351_v49, 2  ;;  %v371_v58 = vrot.slane %v370_v50, 2  ;;  %v390_v59 = vrot.slane %v389_v51, 2 }
  0x93   : > { %v339_v60 = vsel %vm329_vm0, %v338_v52, 0.0  ;;  %v358_v61 = vsel %vm329_vm0, %v357_v53, 0.0  ;;  %v377_v62 = vsel %vm329_vm0, %v376_v54, 0.0  ;;  %v396_v63 = vsel %vm329_vm0, %v395_v55, 0.0 }
  0x94   : > { %v334_v0 = vadd.f32 %v333_v56, %v332_v48  ;;  %v353_v1 = vadd.f32 %v352_v57, %v351_v49  ;;  %v372_v2 = vadd.f32 %v371_v58, %v370_v50  ;;  %v391_v3 = vadd.f32 %v390_v59, %v389_v51 }
  0x95   : > { %v340_v4 = vrot.slane %v339_v60, 4  ;;  %v359_v5 = vrot.slane %v358_v61, 4  ;;  %v378_v6 = vrot.slane %v377_v62, 4  ;;  %v397_v7 = vrot.slane %v396_v63, 4 }
  0x96   : > { %v335_v8 = vrot.slane %v334_v0, 1  ;;  %v354_v9 = vrot.slane %v353_v1, 1  ;;  %v373_v10 = vrot.slane %v372_v2, 1  ;;  %v392_v11 = vrot.slane %v391_v3, 1 }
  0x97   : > { %v341_v12 = vadd.f32 %v340_v4, %v339_v60  ;;  %v360_v13 = vadd.f32 %v359_v5, %v358_v61  ;;  %v379_v14 = vadd.f32 %v378_v6, %v377_v62  ;;  %v398_v15 = vadd.f32 %v397_v7, %v396_v63 }
  0x98   : > { %v336_v16 = vadd.f32 %v335_v8, %v334_v0  ;;  %v355_v17 = vadd.f32 %v354_v9, %v353_v1  ;;  %v374_v18 = vadd.f32 %v373_v10, %v372_v2  ;;  %v393_v19 = vadd.f32 %v392_v11, %v391_v3 }
  0x99   : > { %v342_v20 = vrot.slane %v341_v12, 2  ;;  %v361_v21 = vrot.slane %v360_v13, 2  ;;  %v380_v22 = vrot.slane %v379_v14, 2  ;;  %v399_v23 = vrot.slane %v398_v15, 2 }
  0x9a   : > { %v405_v25 = vsel %vm404_vm5, %v336_v16, %v355_v17 }
  0x9b   : > { %v406_v26 = vsel %vm329_vm0, %v405_v25, %v374_v18  ;;  %v343_v27 = vadd.f32 %v342_v20, %v341_v12  ;;  %v362_v28 = vadd.f32 %v361_v21, %v360_v13  ;;  %v381_v29 = vadd.f32 %v380_v22, %v379_v14 }
  0x9c   : > { %v408_v30 = vsel %vm407_vm6, %v406_v26, %v393_v19  ;;  %v400_v31 = vadd.f32 %v399_v23, %v398_v15 }
  0x9d   : > { %v409_v32 = vadd.f32 %v408_v30, %v403_v24  ;;  %v344_v33 = vrot.slane %v343_v27, 1  ;;  %v363_v34 = vrot.slane %v362_v28, 1  ;;  %v382_v35 = vrot.slane %v381_v29, 1 }
  0x9e   : > { %v401_v36 = vrot.slane %v400_v31, 1 }
  0x9f   : > { %410 = vst [vmem:[%s1073_s6] sm:$0xf] %v409_v32  ;;  %v345_v37 = vadd.f32 %v344_v33, %v343_v27  ;;  %v364_v38 = vadd.f32 %v363_v34, %v362_v28  ;;  %v383_v39 = vadd.f32 %v382_v35, %v381_v29 }
  0xa0   : > { %v402_v40 = vadd.f32 %v401_v36, %v400_v31 }
  0xa1   : > { %774 = shalt.err (!%p771_p9)
}
  0xa2   : > { %s775_s9 = scalar_lea.hbm %s1107_s18, 64  ;;  %s779_s4 = scalar_lea.hbm %s1196_s2, 128 }
  0xa3   : > { %p776_p1 = scmp.ne.s32.totalorder %s1107_s18, %s775_s9  ;;  %p780_p5 = scmp.lt.u32.totalorder %s1107_s18, %s1196_s2 }
  0xa4   : > { %p781_p13 = scmp.lt.u32.totalorder %s779_s4, %s775_s9  ;;  %p783_p8 = scmp.lt.u32.totalorder %s775_s9, %s1107_s18 }
  0xa5   : > { %p777_p6 = pnand %p776_p1, %p1209_p0 }
  0xa6   : > { %p782_p3 = por %p781_p13, %p780_p5 }
  0xa7   : > { %p778_p2 = pneg %p777_p6 }
  0xa8   : > { %p784_p11 = por %p783_p8, %p782_p3 }
  0xaa   : > { %p785_p4 = pnand %p784_p11, %p778_p2 }
  0xac   : > { %788 = shalt.err (!%p785_p4)
}
  0xad   : > { %620 = dma.vmem_to_hbm [thread:$0]  (%p1209_p0), %s1109_s11, 64, %s1107_s18, %s418_s22   ;;  %v411_v41 = vld [vmem:[%s1076_s7] sm:$0xf]  ;;  %v412_v42 = vsel %vm404_vm5, %v345_v37, %v364_v38 }
  0xae   : > { %s451_s28 = sshll.u32 %s1076_s7, 4  ;;  %v413_v43 = vsel %vm329_vm0, %v412_v42, %v383_v39  ;;  %s1144_s10 = scalar_lea.hbm %s1197_s3, %s611_s24  ;;  %s1146_s28 = int_to_ptr.vmem [resolvable:$true] %s451_s28 }
  0xaf   : > { %v414_v44 = vsel %vm407_vm6, %v413_v43, %v402_v40  ;;  %s423_s11 = scalar_lea.sflag [#allocation9], %s1056_s30  ;;  %s789_s18 = scalar_lea.vmem %s1146_s28, 64 }
  0xb0   : > { %v415_v45 = vadd.f32 %v414_v44, %v411_v41  ;;  %p790_p7 = scmp.ne.s32.totalorder %s1146_s28, %s789_s18  ;;  %s887_s22 = smov [#allocation8]  }
  0xb1   : > { %s793_s5 = sshll.u32 %s887_s22, 4  ;;  %s794_s5 = int_to_ptr.vmem [resolvable:$false] %s793_s5 }
  0xb2   : > { %416 = vst [vmem:[%s1076_s7] sm:$0xf] %v415_v45  ;;  %p791_p10 = pnand %p790_p7, %p1209_p0  ;;  %s795_s15 = scalar_lea.vmem %s794_s5, 128 }
  0xb3   : > { %p796_p9 = scmp.lt.s32.totalorder %s1146_s28, %s794_s5  ;;  %p797_p1 = scmp.lt.s32.totalorder %s795_s15, %s789_s18 }
  0xb4   : > { %p792_p12 = pneg %p791_p10 }
  0xb5   : > { %p798_p6 = por %p797_p1, %p796_p9 }
  0xb7   : > { %p799_p2 = pnand %p798_p6, %p792_p12 }
  0xb9   : > { %802 = shalt.err (!%p799_p2)
}
  0xba   : > { %s803_s30 = scalar_lea.hbm %s1144_s10, 64  ;;  %s807_s9 = scalar_lea.hbm %s1197_s3, 128 }
  0xbb   : > { %p804_p5 = scmp.ne.s32.totalorder %s1144_s10, %s803_s30  ;;  %p808_p8 = scmp.lt.u32.totalorder %s1144_s10, %s1197_s3 }
  0xbc   : > { %p809_p11 = scmp.lt.u32.totalorder %s807_s9, %s803_s30  ;;  %p811_p7 = scmp.lt.u32.totalorder %s803_s30, %s1144_s10 }
  0xbd   : > { %p805_p13 = pnand %p804_p5, %p1209_p0 }
  0xbe   : > { %p810_p4 = por %p809_p11, %p808_p8 }
  0xbf   : > { %p806_p3 = pneg %p805_p13 }
  0xc0   : > { %p812_p10 = por %p811_p7, %p810_p4 }
  0xc2   : > { %p813_p12 = pnand %p812_p10, %p806_p3 }
  0xc4   : > { %816 = shalt.err (!%p813_p12)
}
  0xc5   : > { %621 = dma.vmem_to_hbm [thread:$0]  (%p1209_p0), %s1146_s28, 64, %s1144_s10, %s423_s11  }
  0xc6 PF: > { %s463_s4 = sand.u32 1, %s859_s12   ;;  %p1210_p9 = scmp.ne.s32.totalorder %s1203_s27, 0 }
  0xc7   : > { %p1211_p1 = scmp.ge.s32.totalorder %s879_s17, 2  ;;  %s464_s6 = scalar_lea.sflag [#allocation4], %s463_s4 }
  0xc9   : > { %p632_p6 = pnand %p1211_p1, %p1210_p9 }
  0xcb   : > { %850 = dma.done.wait (!%p632_p6), %s464_s6, 64  }
  0xcc   : > { %852 = vsyncadd (!%p632_p6), %s464_s6, 4294967232  ;;  %s473_s19 = scalar_lea.sflag [#allocation9], %s463_s4 }
  0xcd   : > { %854 = dma.done.wait (!%p632_p6), %s473_s19, 64  }
  0xce   : > { %856 = vsyncadd (!%p632_p6), %s473_s19, 4294967232  ;;  %s26_s17 = sadd.s32 1, %s879_s17   ;;  %s1212_s12 = smov %s863_s13 }
  0xcf   : > { %p23_p2 = scmp.ge.s32.totalorder %s26_s17, 4   ;;  %s1213_s13 = smov %s867_s14 }
  0xd0   : > { %s1214_s14 = smov %s964_s26  ;;  %s1215_s15 = smov %s875_s16 }
  0xd1   : > { %s1216_s16 = smov %s1218_s20  ;;  %25 = sbr.rel (!%p23_p2) target bundleno = 10 (0xa), region = 110 }
  0xd8   :  { %478 = vsyncpa [#allocation3], 1 }
  0xd9   :  { %480 = vsyncpa [#allocation3 + $0x1], 1 }
  0xda   :  { %481 = vsyncpa [#allocation6], 1 }
  0xdb   :  { %483 = vsyncpa [#allocation6 + $0x1], 1 }
  0xdc   :  { %484 = vsyncpa [#allocation4], 1 }
  0xdd   :  { %486 = vsyncpa [#allocation4 + $0x1], 1 }
  0xde   :  { %487 = vsyncpa [#allocation9], 1 }
  0xdf   :  { %489 = vsyncpa [#allocation9 + $0x1], 1 }

</bundles_post_ra>
